<compile_context>
chip_gen: v7x
topology: tpu7x:2x2x1
jax: 0.10.0
libtpu: 0.0.40
codegen_flags: <defaults>
</compile_context>

<pallas_src>
import functools

import jax
import jax.numpy as jnp
import numpy as np
from jax.experimental import pallas as pl
from jax.experimental.pallas import tpu as pltpu

EPSILON = 1e-5


def _stats_kernel(len_ref, x_ref, mean_ref, std_ref, *, eps, tile_t):
    # len_ref:  VMEM (TB, 1)     int32 sequence lengths for this batch tile
    # x_ref:    VMEM (TB, tT, D) current (batch-tile, time-tile) slab
    # mean_ref: VMEM (TB, D) f32 -- accumulates sum(x*mask), finalized to mean
    # std_ref:  VMEM (TB, D) f32 -- accumulates sum((x*mask)^2), finalized to std
    kt = pl.program_id(1)

    @pl.when(kt == 0)
    def _init():
        mean_ref[...] = jnp.zeros_like(mean_ref)
        std_ref[...] = jnp.zeros_like(std_ref)

    x = x_ref[...].astype(jnp.float32)                        # (TB, tT, D)
    t0 = kt * tile_t                                          # global time offset
    t_ids = jax.lax.broadcasted_iota(jnp.int32, x.shape[:2] + (1,), 1) + t0
    lens = len_ref[...]                                       # (TB, 1) int32
    mask = t_ids < lens[:, :, None]                           # (TB, tT, 1) bool
    xm = jnp.where(mask, x, 0.0)                              # (TB, tT, D)

    mean_ref[...] += jnp.sum(xm, axis=1)                      # s1
    std_ref[...] += jnp.sum(xm * xm, axis=1)                  # s2

    @pl.when(kt == pl.num_programs(1) - 1)
    def _finalize():
        inv_len = 1.0 / jnp.maximum(lens, 1).astype(jnp.float32)    # (TB, 1)
        mean = mean_ref[...] * inv_len                               # (TB, D)
        var = jnp.maximum(std_ref[...] * inv_len - mean * mean, 0.0)
        mean_ref[...] = mean
        std_ref[...] = jnp.sqrt(var + eps)


def _apply_kernel(x_ref, mean_ref, std_ref, tmean_ref, tstd_ref, o_ref):
    # conditioned = (x - mean) / std * target_std + target_mean  ==  x*scale + shift
    mean = mean_ref[...]                                      # (TB, D) f32
    std = std_ref[...]                                        # (TB, D) f32 (>= sqrt(eps))
    tmean = tmean_ref[...].astype(jnp.float32)
    tstd = tstd_ref[...].astype(jnp.float32)
    scale = tstd / std                                        # (TB, D) -- exact divide, tiny
    shift = tmean - mean * scale                              # (TB, D)
    x = x_ref[...].astype(jnp.float32)                        # (TB, tT, D)
    o_ref[...] = (x * scale[:, None, :] + shift[:, None, :]).astype(o_ref.dtype)


def _pick_time_tile(T, TB, D, budget_bytes=2 << 20):
    """Largest time tile (multiple of 8, <= T) whose f32 x-slab stays under budget."""
    if T <= 8:
        return T
    t = budget_bytes // max(TB * D * 4, 1)
    t = max(8, min(T, t))
    t = (t // 8) * 8
    return T if t >= T else t


def statistics_replacement(x, seq_length, target_mean, target_std, eps=EPSILON):
    """Full StatisticsReplacementLayer forward.

    Returns (conditioned_x (B,T,D), mean (B,D), std (B,D)); the layer output is
    conditioned_x, mean/std are the StatisticPool statistics (exposed for testing).
    """
    B, T, D = x.shape
    out_dtype = x.dtype
    seq_length = seq_length.astype(jnp.int32)
    target_mean = target_mean.astype(jnp.float32)
    target_std = target_std.astype(jnp.float32)

    TB = B if B <= 8 else 8
    tT = _pick_time_tile(T, TB, D)
    Bp = ((B + TB - 1) // TB) * TB
    Tp = ((T + tT - 1) // tT) * tT

    if Bp != B or Tp != T:
        x = jnp.pad(x, ((0, Bp - B), (0, Tp - T), (0, 0)))
        seq_length = jnp.pad(seq_length, (0, Bp - B))
        target_mean = jnp.pad(target_mean, ((0, Bp - B), (0, 0)))
        target_std = jnp.pad(target_std, ((0, Bp - B), (0, 0)))

    lens2d = seq_length.reshape(Bp, 1)
    n_b, n_t = Bp // TB, Tp // tT

    mean, std = pl.pallas_call(
        functools.partial(_stats_kernel, eps=eps, tile_t=tT),
        grid_spec=pltpu.PrefetchScalarGridSpec(
            num_scalar_prefetch=0,
            grid=(n_b, n_t),
            in_specs=[
                pl.BlockSpec((TB, 1), lambda bi, kt: (bi, 0)),
                pl.BlockSpec((TB, tT, D), lambda bi, kt: (bi, kt, 0)),
            ],
            out_specs=[
                pl.BlockSpec((TB, D), lambda bi, kt: (bi, 0)),
                pl.BlockSpec((TB, D), lambda bi, kt: (bi, 0)),
            ],
        ),
        out_shape=(
            jax.ShapeDtypeStruct((Bp, D), jnp.float32),
            jax.ShapeDtypeStruct((Bp, D), jnp.float32),
        ),
        compiler_params=pltpu.CompilerParams(
            dimension_semantics=("parallel", "arbitrary"),
        ),
    )(lens2d, x)

    conditioned = pl.pallas_call(
        _apply_kernel,
        grid_spec=pltpu.PrefetchScalarGridSpec(
            num_scalar_prefetch=0,
            grid=(n_b, n_t),
            in_specs=[
                pl.BlockSpec((TB, tT, D), lambda bi, kt: (bi, kt, 0)),
                pl.BlockSpec((TB, D), lambda bi, kt: (bi, 0)),
                pl.BlockSpec((TB, D), lambda bi, kt: (bi, 0)),
                pl.BlockSpec((TB, D), lambda bi, kt: (bi, 0)),
                pl.BlockSpec((TB, D), lambda bi, kt: (bi, 0)),
            ],
            out_specs=pl.BlockSpec((TB, tT, D), lambda bi, kt: (bi, kt, 0)),
        ),
        out_shape=jax.ShapeDtypeStruct((Bp, Tp, D), out_dtype),
        compiler_params=pltpu.CompilerParams(
            dimension_semantics=("parallel", "parallel"),
        ),
    )(x, mean, std, target_mean, target_std)

    if Bp != B or Tp != T:
        conditioned = conditioned[:B, :T, :]
        mean = mean[:B]
        std = std[:B]
    return conditioned, mean, std


def _reference(x, seq_length, target_mean, target_std, eps=EPSILON):
    # Pure-JAX mirror of the PyTorch forward (two-pass StatisticPool + replacement).
    B, T, D = x.shape
    ids = jnp.arange(T)[None, :]                              # (1, T)
    mask = (ids < seq_length[:, None]).astype(x.dtype)[:, :, None]  # (B, T, 1)
    xm = x * mask
    lens = seq_length.astype(x.dtype)[:, None]                # (B, 1)
    mean = jnp.sum(xm, axis=1) / lens                         # (B, D)
    cut = (xm - mean[:, None, :]) * mask
    var = jnp.sum(jnp.square(cut), axis=1) / lens
    std = jnp.sqrt(var + eps)
    cond = (x - mean[:, None, :]) / std[:, None, :] * target_std[:, None, :] + target_mean[:, None, :]
    return cond, mean, std


if __name__ == "__main__":
    key = jax.random.PRNGKey(0)
    B, T, D = 2, 16, 32
    kx, km, ks = jax.random.split(key, 3)
    x = jax.random.normal(kx, (B, T, D), dtype=jnp.float32)
    # max(seq_length) == T, matching get_mask_from_lengths semantics.
    seq_length = jnp.array([16, 11], dtype=jnp.int32)
    target_mean = jax.random.normal(km, (B, D), dtype=jnp.float32)
    target_std = jax.random.uniform(ks, (B, D), dtype=jnp.float32, minval=0.5, maxval=2.0)

    cond, mean, std = statistics_replacement(x, seq_length, target_mean, target_std)
    jax.block_until_ready((cond, mean, std))

    r_cond, r_mean, r_std = _reference(x, seq_length, target_mean, target_std)
    np.testing.assert_allclose(np.asarray(mean), np.asarray(r_mean), rtol=1e-5, atol=1e-5)
    np.testing.assert_allclose(np.asarray(std), np.asarray(r_std), rtol=1e-5, atol=1e-5)
    np.testing.assert_allclose(np.asarray(cond), np.asarray(r_cond), rtol=1e-4, atol=1e-4)

    print("KERNEL_OK")
</pallas_src>

<mosaic_0001>
module attributes {stable_mosaic.version = 11 : i64} {
  func.func @_stats_kernel(%arg0: i32, %arg1: i32, %arg2: memref<2x1xi32, #tpu.memory_space<vmem>>, %arg3: memref<2x16x32xf32, #tpu.memory_space<vmem>>, %arg4: memref<2x32xf32, #tpu.memory_space<vmem>>, %arg5: memref<2x32xf32, #tpu.memory_space<vmem>>) attributes {dimension_semantics = [#tpu.dimension_semantics<parallel>, #tpu.dimension_semantics<arbitrary>], iteration_bounds = array<i64: 1, 1>, scalar_prefetch = 0 : i64, scratch_operands = 0 : i64, tpu.core_type = #tpu.core_type<tc>, window_params = [{transform_indices = @transform_0, window_bounds = array<i64: 2, 1>}, {transform_indices = @transform_1, window_bounds = array<i64: 2, 16, 32>}, {transform_indices = @transform_2, window_bounds = array<i64: 2, 32>}, {transform_indices = @transform_3, window_bounds = array<i64: 2, 32>}]} {
    %c0_i32 = arith.constant 0 : i32
    %0 = arith.cmpi eq, %arg1, %c0_i32 : i32
    %1 = arith.extui %0 : i1 to i32
    %c0_i32_0 = arith.constant 0 : i32
    %2 = arith.cmpi ne, %1, %c0_i32_0 : i32
    scf.if %2 {
      %cst_17 = arith.constant 0.000000e+00 : f32
      %28 = vector.broadcast %cst_17 : f32 to vector<2x32xf32>
      %c0_18 = arith.constant 0 : index
      %c0_19 = arith.constant 0 : index
      %29 = vector.load %arg4[%c0_18, %c0_19] : memref<2x32xf32, #tpu.memory_space<vmem>>, vector<2x32xf32>
      tpu.vector_store %arg4[%c0_18, %c0_19], %28 {strides = array<i32>} : memref<2x32xf32, #tpu.memory_space<vmem>>, vector<2x32xf32>,
      %cst_20 = arith.constant 0.000000e+00 : f32
      %30 = vector.broadcast %cst_20 : f32 to vector<2x32xf32>
      %c0_21 = arith.constant 0 : index
      %c0_22 = arith.constant 0 : index
      %31 = vector.load %arg5[%c0_21, %c0_22] : memref<2x32xf32, #tpu.memory_space<vmem>>, vector<2x32xf32>
      tpu.vector_store %arg5[%c0_21, %c0_22], %30 {strides = array<i32>} : memref<2x32xf32, #tpu.memory_space<vmem>>, vector<2x32xf32>,
    } else {
    }
    %c0 = arith.constant 0 : index
    %c0_1 = arith.constant 0 : index
    %c0_2 = arith.constant 0 : index
    %3 = vector.load %arg3[%c0, %c0_1, %c0_2] : memref<2x16x32xf32, #tpu.memory_space<vmem>>, vector<2x16x32xf32>
    %c16_i32 = arith.constant 16 : i32
    %4 = arith.muli %arg1, %c16_i32 : i32
    %5 = tpu.iota {dimensions = array<i32: 1>} : vector<2x16x1xi32>
    %6 = vector.broadcast %4 : i32 to vector<2x16x1xi32>
    %7 = arith.addi %5, %6 : vector<2x16x1xi32>
    %c0_3 = arith.constant 0 : index
    %c0_4 = arith.constant 0 : index
    %8 = vector.load %arg2[%c0_3, %c0_4] : memref<2x1xi32, #tpu.memory_space<vmem>>, vector<2x1xi32>
    %9 = vector.shape_cast %8 : vector<2x1xi32> to vector<2x1x1xi32>
    %10 = vector.broadcast %9 : vector<2x1x1xi32> to vector<2x16x1xi32>
    %11 = arith.cmpi slt, %7, %10 : vector<2x16x1xi32>
    %cst = arith.constant 0.000000e+00 : f32
    %12 = vector.shape_cast %11 : vector<2x16x1xi1> to vector<2x16x1xi1>
    %13 = vector.broadcast %12 : vector<2x16x1xi1> to vector<2x16x32xi1>
    %14 = vector.broadcast %cst : f32 to vector<2x16x32xf32>
    %15 = arith.select %13, %3, %14 : vector<2x16x32xi1>, vector<2x16x32xf32>
    %c0_5 = arith.constant 0 : index
    %c0_6 = arith.constant 0 : index
    %16 = vector.load %arg4[%c0_5, %c0_6] : memref<2x32xf32, #tpu.memory_space<vmem>>, vector<2x32xf32>
    %cst_7 = arith.constant dense<0.000000e+00> : vector<2x32xf32>
    %17 = vector.multi_reduction <add>, %15, %cst_7 [1] : vector<2x16x32xf32> to vector<2x32xf32>
    %18 = arith.addf %16, %17 : vector<2x32xf32>
    %c0_8 = arith.constant 0 : index
    %c0_9 = arith.constant 0 : index
    %19 = vector.load %arg4[%c0_8, %c0_9] : memref<2x32xf32, #tpu.memory_space<vmem>>, vector<2x32xf32>
    tpu.vector_store %arg4[%c0_8, %c0_9], %18 {strides = array<i32>} : memref<2x32xf32, #tpu.memory_space<vmem>>, vector<2x32xf32>,
    %c0_10 = arith.constant 0 : index
    %c0_11 = arith.constant 0 : index
    %20 = vector.load %arg5[%c0_10, %c0_11] : memref<2x32xf32, #tpu.memory_space<vmem>>, vector<2x32xf32>
    %21 = arith.mulf %15, %15 : vector<2x16x32xf32>
    %cst_12 = arith.constant dense<0.000000e+00> : vector<2x32xf32>
    %22 = vector.multi_reduction <add>, %21, %cst_12 [1] : vector<2x16x32xf32> to vector<2x32xf32>
    %23 = arith.addf %20, %22 : vector<2x32xf32>
    %c0_13 = arith.constant 0 : index
    %c0_14 = arith.constant 0 : index
    %24 = vector.load %arg5[%c0_13, %c0_14] : memref<2x32xf32, #tpu.memory_space<vmem>>, vector<2x32xf32>
    tpu.vector_store %arg5[%c0_13, %c0_14], %23 {strides = array<i32>} : memref<2x32xf32, #tpu.memory_space<vmem>>, vector<2x32xf32>,
    %c0_i32_15 = arith.constant 0 : i32
    %25 = arith.cmpi eq, %arg1, %c0_i32_15 : i32
    %26 = arith.extui %25 : i1 to i32
    %c0_i32_16 = arith.constant 0 : i32
    %27 = arith.cmpi ne, %26, %c0_i32_16 : i32
    scf.if %27 {
      %c1_i32 = arith.constant 1 : i32
      %28 = vector.broadcast %c1_i32 : i32 to vector<2x1xi32>
      %29 = arith.maxsi %8, %28 : vector<2x1xi32>
      %30 = arith.sitofp %29 : vector<2x1xi32> to vector<2x1xf32>
      %cst_17 = arith.constant 1.000000e+00 : f32
      %31 = vector.broadcast %cst_17 : f32 to vector<2x1xf32>
      %32 = arith.divf %31, %30 : vector<2x1xf32>
      %c0_18 = arith.constant 0 : index
      %c0_19 = arith.constant 0 : index
      %33 = vector.load %arg4[%c0_18, %c0_19] : memref<2x32xf32, #tpu.memory_space<vmem>>, vector<2x32xf32>
      %34 = vector.broadcast %32 : vector<2x1xf32> to vector<2x32xf32>
      %35 = arith.mulf %33, %34 : vector<2x32xf32>
      %c0_20 = arith.constant 0 : index
      %c0_21 = arith.constant 0 : index
      %36 = vector.load %arg5[%c0_20, %c0_21] : memref<2x32xf32, #tpu.memory_space<vmem>>, vector<2x32xf32>
      %37 = vector.broadcast %32 : vector<2x1xf32> to vector<2x32xf32>
      %38 = arith.mulf %36, %37 : vector<2x32xf32>
      %39 = arith.mulf %35, %35 : vector<2x32xf32>
      %40 = arith.subf %38, %39 : vector<2x32xf32>
      %cst_22 = arith.constant 0.000000e+00 : f32
      %41 = vector.broadcast %cst_22 : f32 to vector<2x32xf32>
      %42 = arith.maximumf %40, %41 : vector<2x32xf32>
      %c0_23 = arith.constant 0 : index
      %c0_24 = arith.constant 0 : index
      %43 = vector.load %arg4[%c0_23, %c0_24] : memref<2x32xf32, #tpu.memory_space<vmem>>, vector<2x32xf32>
      tpu.vector_store %arg4[%c0_23, %c0_24], %35 {strides = array<i32>} : memref<2x32xf32, #tpu.memory_space<vmem>>, vector<2x32xf32>,
      %cst_25 = arith.constant 9.99999974E-6 : f32
      %44 = vector.broadcast %cst_25 : f32 to vector<2x32xf32>
      %45 = arith.addf %42, %44 : vector<2x32xf32>
      %46 = math.sqrt %45 : vector<2x32xf32>
      %c0_26 = arith.constant 0 : index
      %c0_27 = arith.constant 0 : index
      %47 = vector.load %arg5[%c0_26, %c0_27] : memref<2x32xf32, #tpu.memory_space<vmem>>, vector<2x32xf32>
      tpu.vector_store %arg5[%c0_26, %c0_27], %46 {strides = array<i32>} : memref<2x32xf32, #tpu.memory_space<vmem>>, vector<2x32xf32>,
    } else {
    }
    return
  }
  func.func @transform_0(%arg0: i32, %arg1: i32) -> (i32, i32) {
    %c0_i32 = arith.constant 0 : i32
    %c0_i32_0 = arith.constant 0 : i32
    return %arg0, %c0_i32 : i32, i32
  }
  func.func @transform_1(%arg0: i32, %arg1: i32) -> (i32, i32, i32) {
    %c0_i32 = arith.constant 0 : i32
    %c0_i32_0 = arith.constant 0 : i32
    return %arg0, %arg1, %c0_i32 : i32, i32, i32
  }
  func.func @transform_2(%arg0: i32, %arg1: i32) -> (i32, i32) {
    %c0_i32 = arith.constant 0 : i32
    %c0_i32_0 = arith.constant 0 : i32
    return %arg0, %c0_i32 : i32, i32
  }
  func.func @transform_3(%arg0: i32, %arg1: i32) -> (i32, i32) {
    %c0_i32 = arith.constant 0 : i32
    %c0_i32_0 = arith.constant 0 : i32
    return %arg0, %c0_i32 : i32, i32
  }
}

</mosaic_0001>

<bundles_post_ra>
// kernel: tpu_custom_call.1
= control target key start
LH: loop header
LB: loop body
LE: loop exit
PB: predicated region body
PF: predicated region fallthrough
CT: control target
= control target key end

     0   :  { %9 = vsyncpa [#allocation3], 0  ;;  %s389_s0 = inlined_call_operand.vmem [shape: s32[2,1], index: 0, kind: input, shape index: {}]   ;;  %s390_s1 = inlined_call_operand.hbm [shape: f32[2,16,32], index: 1, kind: input, shape index: {}]   ;;  %s391_s2 = inlined_call_operand.hbm [shape: f32[2,32], index: 2, kind: output, shape index: {0}]   ;;  %s392_s3 = inlined_call_operand.hbm [shape: f32[2,32], index: 3, kind: output, shape index: {1}]  }
   0x1   :  { %10 = vsyncpa [#allocation4], 0 }
   0x2   :  { %11 = vsyncpa [#allocation7], 0  ;;  %s308_s12 = smov [#allocation2]   ;;  %s236_s16 = scalar_lea.hbm %s390_s1, 512 }
   0x3   :  { %s19_s13 = sshll.u32 %s308_s12, 4  ;;  %p237_p0 = scmp.ne.s32.totalorder %s390_s1, %s236_s16  ;;  %s20_s13 = int_to_ptr.vmem [resolvable:$true] %s19_s13 }
   0x4   :  { %p240_p1 = scmp.lt.u32.totalorder %s236_s16, %s390_s1 }
   0x6   :  { %p242_p2 = pnand %p240_p1, %p237_p0 }
   0x8   :  { %245 = shalt.err (!%p242_p2)
}
   0x9   :  { %s246_s21 = scalar_lea.vmem %s20_s13, 512  ;;  %p251_p4 = scmp.lt.s32.totalorder %s20_s13, %s20_s13 }
   0xa   :  { %p247_p3 = scmp.ne.s32.totalorder %s20_s13, %s246_s21  ;;  %p252_p5 = scmp.lt.s32.totalorder %s246_s21, %s246_s21 }
   0xc   :  { %p253_p6 = por %p252_p5, %p251_p4 }
   0xe   :  { %p254_p7 = pnand %p253_p6, %p247_p3 }
  0x10   :  { %257 = shalt.err (!%p254_p7)
}
  0x11   :  { %s309_s22 = smov 128   ;;  %s310_s23 = smov 8  }
  0x12   :  { %25 = dma.hbm_to_vmem [thread:$0]  %s390_s1, 512, %s20_s13, [#allocation3], %s309_s22, %s309_s22, %s310_s23  }
  0x13   :  { %302 = dma.done.wait [#allocation3], 512  }
  0x14   :  { %303 = vsyncadd [#allocation3], 4294966784  ;;  %v41_v0 = vlaneseq  ;;  %v311_v1 = vmov 0   ;;  %v312_v2 = vmov 1966171168   ;;  %vm33_vm5 = vcmask 254976  }
  0x15   :  { %230 = vset.pattern.permute.xlu0 %v311_v1  ;;  %v49_v3 = vunpack.c.l.s4 %v312_v2  ;;  %231 = vset.pattern.permute.xlu1 %v311_v1  ;;  %v47_v7 = vld [vmem:[%s389_s0] sm:$0x3]  ;;  %v313_v23 = vmov 0.0   ;;  %v38_v26 = vld [vmem:[#allocation2 + $0x10] sm:$0xff]  ;;  %vm107_vm7 = vcmask 261120   ;;  %v37_v29 = vld [vmem:[#allocation2 + $0x8] sm:$0xff] }
  0x16   :  { %v42_v4 = vshrl.u32 %v41_v0, 7  ;;  %vm166_vm0 = vcmp.gt.s32.totalorder %v47_v7, 1  ;;  %34 = vst.msk [vmem:[#allocation5] sm:$0x3] %vm33_vm5, %v313_v23  ;;  %35 = vst.msk [vmem:[#allocation6] sm:$0x3] %vm33_vm5, %v313_v23 }
  0x17   :  { %v50_v5 = vunpack.c.0.s8 %v49_v3  ;;  %v167_v10 = vsel %vm166_vm0, %v47_v7, 1  ;;  %v36_v24 = vld [vmem:[#allocation2] sm:$0xff]  ;;  %v39_v33 = vld [vmem:[#allocation2 + $0x18] sm:$0xff]  ;;  %vm128_vm11 = vcmask 1041409   ;;  %s314_s0 = smov [#allocation5]  }
  0x18   :  { %v72_v9 = vsub.s32 0, %v42_v4  ;;  %v168_v12 = vcvt.s32.f32 %v167_v10  ;;  %v43_v14 = vadd.s32 8, %v42_v4  ;;  %s199_s1 = sshll.u32 %s314_s0, 4  ;;  %s200_s1 = int_to_ptr.vmem [resolvable:$true] %s199_s1 }
  0x19   :  { %v53_v6 = vsub.s32 %v50_v5, %v42_v4  ;;  %s258_s28 = scalar_lea.vmem %s200_s1, 32  ;;  %p263_p9 = scmp.lt.s32.totalorder %s200_s1, %s200_s1 }
  0x1a   :  { %232 = vrcp.f32 %v168_v12  ;;  %p259_p8 = scmp.ne.s32.totalorder %s200_s1, %s258_s28  ;;  %p264_p10 = scmp.lt.s32.totalorder %s258_s28, %s258_s28 }
  0x1b   :  { %v54_v8 = vrot.slane %v47_v7, %v53_v6 }
  0x1c   :  { %p265_p11 = por %p264_p10, %p263_p9 }
  0x1d   :  { %v62_v11 = vrot.slane %v54_v8, %v53_v6  ;;  %v55_v13 = vcombine.high %v54_v8, %v54_v8  ;;  %v106_v8 = vld [vmem:[#allocation5] sm:$0x3] }
  0x1e   :  { %p266_p12 = pnand %p265_p11, %p259_p8 }
  0x1f   :  { %v73_v15 = vrot.slane %v62_v11, %v72_v9  ;;  %v69_v16 = vrot.slane %v55_v13, %v53_v6  ;;  %v134_v13 = vld [vmem:[#allocation6] sm:$0x3] }
  0x21   :  { %vm78_vm1 = vcmp.lt.s32.totalorder %v42_v4, %v73_v15  ;;  %v77_v17 = vrot.slane %v69_v16, %v72_v9  ;;  %vm79_vm2 = vcmp.lt.s32.totalorder %v43_v14, %v73_v15 }
  0x22   :  { %v82_v18 = vsel %vm78_vm1, 1, %v311_v1  ;;  %v83_v20 = vsel %vm79_vm2, 1, %v311_v1 }
  0x23   :  { %87 = vperm.xlu0 %230, %v82_v18   ;;  %vm80_vm3 = vcmp.lt.s32.totalorder %v42_v4, %v77_v17  ;;  %vm81_vm4 = vcmp.lt.s32.totalorder %v43_v14, %v77_v17 }
  0x24   :  { %v84_v19 = vsel %vm80_vm3, 1, %v311_v1  ;;  %v85_v21 = vsel %vm81_vm4, 1, %v311_v1  ;;  %v233_v22 = vpop.eup %232 }
  0x25   :  { %93 = vperm.xlu1 %231, %v84_v19  }
  0x27   :  { %90 = vperm.xlu0 %230, %v83_v20  }
  0x29   :  { %96 = vperm.xlu1 %231, %v85_v21  }
  0x2b   :  { %174 = vperm.xlu0 %230, %v233_v22  }
  0xa2   :  { %v88_v25 = vpop.permute.xlu0 %87 }
  0xa3   :  { %vm98_vm6 = vcmp.eq.s32.totalorder %v88_v25, 1 }
  0xa4   :  { %v102_v27 = vsel %vm98_vm6, %v36_v24, 0.0  ;;  %v94_v28 = vpop.permute.xlu1 %93 }
  0xa5   :  { %vm100_vm8 = vcmp.eq.s32.totalorder %v94_v28, 1  ;;  %v135_v30 = vmul.f32 %v102_v27, %v102_v27  ;;  %v108_v34 = vsel %vm107_vm7, %v102_v27, 0.0 }
  0xa6   :  { %v104_v31 = vsel %vm100_vm8, %v38_v26, 0.0  ;;  %v91_v32 = vpop.permute.xlu0 %90 }
  0xa7   :  { %vm99_vm9 = vcmp.eq.s32.totalorder %v91_v32, 1  ;;  %v137_v37 = vmul.f32 %v104_v31, %v104_v31  ;;  %v139_v40 = vsel %vm107_vm7, %v135_v30, 0.0  ;;  %v117_v43 = vsel %vm107_vm7, %v104_v31, 0.0 }
  0xa8   :  { %v103_v35 = vsel %vm99_vm9, %v37_v29, 0.0  ;;  %v97_v36 = vpop.permute.xlu1 %96 }
  0xa9   :  { %v109_v38 = vsel %vm107_vm7, %v103_v35, 0.0  ;;  %v136_v39 = vmul.f32 %v103_v35, %v103_v35  ;;  %vm101_vm10 = vcmp.eq.s32.totalorder %v97_v36, 1  ;;  %v148_v50 = vsel %vm107_vm7, %v137_v37, 0.0 }
  0xaa   :  { %v110_v41 = vadd.f32 %v109_v38, %v108_v34  ;;  %v105_v42 = vsel %vm101_vm10, %v39_v33, 0.0  ;;  %v175_v18 = vpop.permute.xlu0 %174 }
  0xab   :  { %v140_v44 = vsel %vm107_vm7, %v136_v39, 0.0  ;;  %v118_v45 = vsel %vm107_vm7, %v105_v42, 0.0  ;;  %v138_v46 = vmul.f32 %v105_v42, %v105_v42 }
  0xac   :  { %v111_v47 = vrot.slane %v110_v41, 4  ;;  %v141_v48 = vadd.f32 %v140_v44, %v139_v40  ;;  %v119_v49 = vadd.f32 %v118_v45, %v117_v43 }
  0xad   :  { %v149_v51 = vsel %vm107_vm7, %v138_v46, 0.0 }
  0xae   :  { %v112_v52 = vadd.f32 %v111_v47, %v110_v41  ;;  %v142_v53 = vrot.slane %v141_v48, 4  ;;  %v120_v54 = vrot.slane %v119_v49, 4  ;;  %v150_v55 = vadd.f32 %v149_v51, %v148_v50 }
  0xb0   :  { %v113_v56 = vrot.slane %v112_v52, 2  ;;  %v143_v57 = vadd.f32 %v142_v53, %v141_v48  ;;  %v121_v58 = vadd.f32 %v120_v54, %v119_v49  ;;  %v151_v59 = vrot.slane %v150_v55, 4 }
  0xb2   :  { %v114_v60 = vadd.f32 %v113_v56, %v112_v52  ;;  %v144_v61 = vrot.slane %v143_v57, 2  ;;  %v122_v62 = vrot.slane %v121_v58, 2  ;;  %v152_v63 = vadd.f32 %v151_v59, %v150_v55 }
  0xb4   :  { %v115_v0 = vrot.slane %v114_v60, 1  ;;  %v145_v1 = vadd.f32 %v144_v61, %v143_v57  ;;  %v123_v2 = vadd.f32 %v122_v62, %v121_v58  ;;  %v153_v3 = vrot.slane %v152_v63, 2 }
  0xb6   :  { %v146_v4 = vrot.slane %v145_v1, 1  ;;  %v124_v5 = vrot.slane %v123_v2, 1  ;;  %v154_v6 = vadd.f32 %v153_v3, %v152_v63  ;;  %v116_v7 = vadd.f32 %v115_v0, %v114_v60 }
  0xb8   :  { %v125_v9 = vadd.f32 %v124_v5, %v123_v2  ;;  %v155_v10 = vrot.slane %v154_v6, 1  ;;  %v147_v11 = vadd.f32 %v146_v4, %v145_v1 }
  0xba   :  { %v129_v12 = vsel %vm128_vm11, %v125_v9, %v116_v7  ;;  %v156_v14 = vadd.f32 %v155_v10, %v154_v6 }
  0xbb   :  { %v131_v15 = vadd.f32 %v129_v12, %v106_v8 }
  0xbc   :  { %v159_v16 = vsel %vm128_vm11, %v156_v14, %v147_v11 }
  0xbd   :  { %133 = vst.msk [vmem:[#allocation5] sm:$0x3] %vm33_vm5, %v131_v15  ;;  %v161_v17 = vadd.f32 %v159_v16, %v134_v13 }
  0xbf   :  { %162 = vst.msk [vmem:[#allocation6] sm:$0x3] %vm33_vm5, %v161_v17 }
  0xc4   :  { %v171_v19 = vld [vmem:[#allocation5] sm:$0x3] }
  0xc5   :  { %v177_v20 = vmul.f32 %v175_v18, %v171_v19 }
  0xc6   :  { %v178_v21 = vld [vmem:[#allocation6] sm:$0x3] }
  0xc7   :  { %v179_v22 = vmul.f32 %v178_v21, %v175_v18  ;;  %v180_v23 = vmul.f32 %v177_v20, %v177_v20  ;;  %183 = vst.msk [vmem:[#allocation5] sm:$0x3] %vm33_vm5, %v177_v20 }
  0xc8   :  { %269 = shalt.err (!%p266_p12)
}
  0xc9   :  { %s270_s4 = scalar_lea.hbm %s391_s2, 32 }
  0xca   :  { %p271_p13 = scmp.ne.s32.totalorder %s391_s2, %s270_s4  ;;  %p274_p0 = scmp.lt.u32.totalorder %s270_s4, %s391_s2 }
  0xcc   :  { %p276_p1 = pnand %p274_p0, %p271_p13 }
  0xce   :  { %279 = shalt.err (!%p276_p1)
}
  0xcf   :  { %202 = dma.vmem_to_hbm [thread:$0]  %s200_s1, 32, %s391_s2, [#allocation4]   ;;  %v181_v24 = vsub.f32 %v179_v22, %v180_v23 }
  0xd0   :  { %s315_s11 = smov [#allocation6]  }
  0xd1   :  { %v182_v25 = vmax.f32 %v181_v24, 0.0  ;;  %s209_s12 = sshll.u32 %s315_s11, 4  ;;  %s210_s12 = int_to_ptr.vmem [resolvable:$true] %s209_s12 }
  0xd2   :  { %s280_s13 = scalar_lea.vmem %s210_s12, 32  ;;  %p285_p3 = scmp.lt.s32.totalorder %s210_s12, %s210_s12 }
  0xd3   :  { %v184_v26 = vadd.f32 1e-05, %v182_v25  ;;  %p281_p2 = scmp.ne.s32.totalorder %s210_s12, %s280_s13  ;;  %p286_p4 = scmp.lt.s32.totalorder %s280_s13, %s280_s13 }
  0xd5   :  { %234 = vrsqrt.f32 %v184_v26  ;;  %vm187_vm12 = vcmp.eq.f32.partialorder %v184_v26, inf  ;;  %v190_v29 = vand.u32 2147483648, %v184_v26  ;;  %vm189_vm13 = vcmp.eq.f32.partialorder %v184_v26, 0.0  ;;  %p287_p5 = por %p286_p4, %p285_p3 }
  0xd7   :  { %p288_p6 = pnand %p287_p5, %p281_p2 }
  0xdf   :  { %v235_v27 = vpop.eup %234 }
  0xe0   :  { %v186_v28 = vmul.f32 %v235_v27, %v184_v26 }
  0xe2   :  { %v188_v30 = vsel %vm187_vm12, %v184_v26, %v186_v28 }
  0xe3   :  { %v191_v31 = vsel %vm189_vm13, %v190_v29, %v188_v30 }
  0xe4   :  { %192 = vst.msk [vmem:[#allocation6] sm:$0x3] %vm33_vm5, %v191_v31 }
  0xe5   :  { %291 = shalt.err (!%p288_p6)
}
  0xe6   :  { %s292_s15 = scalar_lea.hbm %s392_s3, 32 }
  0xe7   :  { %p293_p7 = scmp.ne.s32.totalorder %s392_s3, %s292_s15  ;;  %p296_p8 = scmp.lt.u32.totalorder %s292_s15, %s392_s3 }
  0xe9   :  { %p298_p9 = pnand %p296_p8, %p293_p7 }
  0xeb   :  { %301 = shalt.err (!%p298_p9)
}
  0xec   :  { %212 = dma.vmem_to_hbm [thread:$0]  %s210_s12, 32, %s392_s3, [#allocation7]  }
  0xed   :  { %304 = dma.done.wait [#allocation4], 32  }
  0xee   :  { %305 = vsyncadd [#allocation4], 4294967264 }
  0xef   :  { %306 = dma.done.wait [#allocation7], 32  }
  0xf0   :  { %307 = vsyncadd [#allocation7], 4294967264 }
  0xf1   :  { %219 = vsyncpa [#allocation3], 1 }
  0xf2   :  { %220 = vsyncpa [#allocation4], 1 }
  0xf3   :  { %221 = vsyncpa [#allocation7], 1 }

</bundles_post_ra>
